<compile_context>
chip_gen: v5e
topology: v5e:2x2
jax: 0.10.0
libtpu: 0.0.40
codegen_flags: <defaults>
</compile_context>

<pallas_src>
import jax
import jax.numpy as jnp
from jax.experimental import pallas as pl
from jax.experimental.pallas import tpu as pltpu


def _round_up(x, m):
    return ((x + m - 1) // m) * m


def gesture_net_kernel(x_ref, w1_ref, b1_ref, w2_ref, b2_ref, w3_ref, b3_ref, o_ref):
    # x arrives as f32 straight from HBM (no separate pad/cast XLA pass); the
    # bf16 cast here is a free VPU op.  Three bf16 MXU matmuls with f32
    # accumulation; bias-add + ReLU in f32 (v5e VPU has no bf16).
    x = x_ref[...].astype(jnp.bfloat16)                              # (tile_b, F)

    h1 = jnp.dot(x, w1_ref[...], preferred_element_type=jnp.float32) + b1_ref[...]
    h1 = jnp.maximum(h1, 0.0).astype(jnp.bfloat16)

    h2 = jnp.dot(h1, w2_ref[...], preferred_element_type=jnp.float32) + b2_ref[...]
    h2 = jnp.maximum(h2, 0.0).astype(jnp.bfloat16)

    out = jnp.dot(h2, w3_ref[...], preferred_element_type=jnp.float32) + b3_ref[...]
    o_ref[...] = out.astype(o_ref.dtype)                             # (tile_b, C) f32


def _choose_tile_b(B, max_tile_b):
    """Batch tile: large (amortizes ~0.35us/grid-step overhead), multiple of 16,
    capped at ~ceil(B/2) so large batches always yield >=2 grid steps for the
    two v7x TensorCores (batch axis is marked "parallel")."""
    if B <= 16:
        return B  # single tile; block dims equal the full array dims (always legal)
    return max(16, min(max_tile_b, _round_up(pl.cdiv(B, 2), 16)))


def prepare_params(raw):
    """One-time prep (outside the hot path): matmul weights -> bf16,
    biases -> f32. Removes the per-call pad/cast XLA ops entirely."""
    return {
        "w1": raw["w1"].astype(jnp.bfloat16),
        "b1": raw["b1"].astype(jnp.float32),
        "w2": raw["w2"].astype(jnp.bfloat16),
        "b2": raw["b2"].astype(jnp.float32),
        "w3": raw["w3"].astype(jnp.bfloat16),
        "b3": raw["b3"].astype(jnp.float32),
    }


def gesture_net(x, params, *, max_tile_b=2048):
    """x: (B, input_size) float32. params: output of prepare_params()
    (weights transposed (in, out), bf16; biases (1, out), f32)."""
    w1, b1, w2, b2, w3, b3 = (params["w1"], params["b1"], params["w2"],
                              params["b2"], params["w3"], params["b3"])
    B, F = x.shape
    H1 = w1.shape[1]
    H2 = w2.shape[1]
    C = w3.shape[1]

    tile_b = _choose_tile_b(B, max_tile_b)
    grid = (pl.cdiv(B, tile_b),)   # ragged last tile is masked by Pallas

    # VMEM at tile_b=2048: x tiles 2*2048*63*4B ~ 1 MiB, out tiles
    # 2*2048*C*4B ~ 128 KiB, resident weights ~50 KiB -> far below the 32 MiB
    # scoped default on every generation, so no vmem_limit_bytes override.
    return pl.pallas_call(
        gesture_net_kernel,
        out_shape=jax.ShapeDtypeStruct((B, C), jnp.float32),
        grid_spec=pl.GridSpec(
            grid=grid,
            in_specs=[
                pl.BlockSpec((tile_b, F), lambda i: (i, 0)),   # x tile (f32, streamed)
                pl.BlockSpec((F, H1), lambda i: (0, 0)),       # w1 (bf16, resident)
                pl.BlockSpec((1, H1), lambda i: (0, 0)),       # b1 (f32)
                pl.BlockSpec((H1, H2), lambda i: (0, 0)),      # w2
                pl.BlockSpec((1, H2), lambda i: (0, 0)),       # b2
                pl.BlockSpec((H2, C), lambda i: (0, 0)),       # w3 (C == full last dim)
                pl.BlockSpec((1, C), lambda i: (0, 0)),        # b3
            ],
            out_specs=pl.BlockSpec((tile_b, C), lambda i: (i, 0)),
        ),
        compiler_params=pltpu.CompilerParams(
            dimension_semantics=("parallel",)),
    )(x, w1, b1, w2, b2, w3, b3)


def init_params(key, input_size=63, num_classes=8):
    """Deterministic synthetic params (f32). Weights stored transposed: (in, out)."""
    k1, k2, k3, k4, k5, k6 = jax.random.split(key, 6)
    scale1 = 1.0 / jnp.sqrt(input_size)
    scale2 = 1.0 / jnp.sqrt(128.0)
    scale3 = 1.0 / jnp.sqrt(64.0)
    return {
        "w1": jax.random.uniform(k1, (input_size, 128), jnp.float32, -scale1, scale1),
        "b1": jax.random.uniform(k2, (1, 128), jnp.float32, -scale1, scale1),
        "w2": jax.random.uniform(k3, (128, 64), jnp.float32, -scale2, scale2),
        "b2": jax.random.uniform(k4, (1, 64), jnp.float32, -scale2, scale2),
        "w3": jax.random.uniform(k5, (64, num_classes), jnp.float32, -scale3, scale3),
        "b3": jax.random.uniform(k6, (1, num_classes), jnp.float32, -scale3, scale3),
    }


def gesture_net_ref(x, p):
    # Pure-JAX f32 reference.  The kernel uses bf16 matmul inputs with f32
    # accumulation (intentional precision tradeoff) -> loose tolerance below.
    h1 = jnp.maximum(x @ p["w1"] + p["b1"], 0.0)
    h2 = jnp.maximum(h1 @ p["w2"] + p["b2"], 0.0)
    return h2 @ p["w3"] + p["b3"]


if __name__ == "__main__":
    key = jax.random.PRNGKey(0)
    kx, kp = jax.random.split(key)

    batch = 8
    input_size = 63
    # TODO(synk): reference module uses num_classes=len(label_map)==0 (degenerate,
    # empty label_map); use a small non-zero class count for a meaningful output.
    num_classes = 8

    x = jax.random.normal(kx, (batch, input_size), dtype=jnp.float32)
    params = init_params(kp, input_size=input_size, num_classes=num_classes)
    prepped = prepare_params(params)   # one-time, outside the hot path

    out = gesture_net(x, prepped)
    out = jax.block_until_ready(out)

    ref = gesture_net_ref(x, params)
    assert out.shape == (batch, num_classes)
    assert jnp.allclose(out, ref, atol=5e-2, rtol=5e-2), (
        f"max abs diff = {jnp.max(jnp.abs(out - ref))}")

    print("KERNEL_OK")
</pallas_src>

<mosaic_0001>
module attributes {stable_mosaic.version = 11 : i64} {
  func.func @gesture_net_kernel(%arg0: i32, %arg1: memref<8x63xf32, #tpu.memory_space<vmem>>, %arg2: memref<63x128xbf16, #tpu.memory_space<vmem>>, %arg3: memref<1x128xf32, #tpu.memory_space<vmem>>, %arg4: memref<128x64xbf16, #tpu.memory_space<vmem>>, %arg5: memref<1x64xf32, #tpu.memory_space<vmem>>, %arg6: memref<64x8xbf16, #tpu.memory_space<vmem>>, %arg7: memref<1x8xf32, #tpu.memory_space<vmem>>, %arg8: memref<8x8xf32, #tpu.memory_space<vmem>>) attributes {dimension_semantics = [#tpu.dimension_semantics<parallel>], iteration_bounds = array<i64: 1>, scalar_prefetch = 0 : i64, scratch_operands = 0 : i64, tpu.core_type = #tpu.core_type<tc>, window_params = [{transform_indices = @transform_0, window_bounds = array<i64: 8, 63>}, {pipeline_mode = #tpu.pipeline_mode<synchronous>, transform_indices = @transform_1, window_bounds = array<i64: 63, 128>}, {pipeline_mode = #tpu.pipeline_mode<synchronous>, transform_indices = @transform_2, window_bounds = array<i64: 1, 128>}, {pipeline_mode = #tpu.pipeline_mode<synchronous>, transform_indices = @transform_3, window_bounds = array<i64: 128, 64>}, {pipeline_mode = #tpu.pipeline_mode<synchronous>, transform_indices = @transform_4, window_bounds = array<i64: 1, 64>}, {pipeline_mode = #tpu.pipeline_mode<synchronous>, transform_indices = @transform_5, window_bounds = array<i64: 64, 8>}, {pipeline_mode = #tpu.pipeline_mode<synchronous>, transform_indices = @transform_6, window_bounds = array<i64: 1, 8>}, {transform_indices = @transform_7, window_bounds = array<i64: 8, 8>}]} {
    %c0 = arith.constant 0 : index
    %c0_0 = arith.constant 0 : index
    %0 = vector.load %arg1[%c0, %c0_0] : memref<8x63xf32, #tpu.memory_space<vmem>>, vector<8x63xf32>
    %1 = arith.truncf %0 : vector<8x63xf32> to vector<8x63xbf16>
    %c0_1 = arith.constant 0 : index
    %c0_2 = arith.constant 0 : index
    %2 = vector.load %arg2[%c0_1, %c0_2] : memref<63x128xbf16, #tpu.memory_space<vmem>>, vector<63x128xbf16>
    %cst = arith.constant dense<0.000000e+00> : vector<8x128xf32>
    %3 = tpu.matmul %1, %2, %cst {dimension_numbers = #tpu.dot_dimension_numbers<[1], [0], [0], [1], [0, 0, 1, 1], [], []>} : vector<8x63xbf16>, vector<63x128xbf16>, vector<8x128xf32> -> vector<8x128xf32>
    %c0_3 = arith.constant 0 : index
    %c0_4 = arith.constant 0 : index
    %4 = vector.load %arg3[%c0_3, %c0_4] : memref<1x128xf32, #tpu.memory_space<vmem>>, vector<1x128xf32>
    %5 = vector.broadcast %4 : vector<1x128xf32> to vector<8x128xf32>
    %6 = arith.addf %3, %5 : vector<8x128xf32>
    %cst_5 = arith.constant 0.000000e+00 : f32
    %7 = vector.broadcast %cst_5 : f32 to vector<8x128xf32>
    %8 = arith.maximumf %6, %7 : vector<8x128xf32>
    %9 = arith.truncf %8 : vector<8x128xf32> to vector<8x128xbf16>
    %c0_6 = arith.constant 0 : index
    %c0_7 = arith.constant 0 : index
    %10 = vector.load %arg4[%c0_6, %c0_7] : memref<128x64xbf16, #tpu.memory_space<vmem>>, vector<128x64xbf16>
    %cst_8 = arith.constant dense<0.000000e+00> : vector<8x64xf32>
    %11 = tpu.matmul %9, %10, %cst_8 {dimension_numbers = #tpu.dot_dimension_numbers<[1], [0], [0], [1], [0, 0, 1, 1], [], []>} : vector<8x128xbf16>, vector<128x64xbf16>, vector<8x64xf32> -> vector<8x64xf32>
    %c0_9 = arith.constant 0 : index
    %c0_10 = arith.constant 0 : index
    %12 = vector.load %arg5[%c0_9, %c0_10] : memref<1x64xf32, #tpu.memory_space<vmem>>, vector<1x64xf32>
    %13 = vector.broadcast %12 : vector<1x64xf32> to vector<8x64xf32>
    %14 = arith.addf %11, %13 : vector<8x64xf32>
    %cst_11 = arith.constant 0.000000e+00 : f32
    %15 = vector.broadcast %cst_11 : f32 to vector<8x64xf32>
    %16 = arith.maximumf %14, %15 : vector<8x64xf32>
    %17 = arith.truncf %16 : vector<8x64xf32> to vector<8x64xbf16>
    %c0_12 = arith.constant 0 : index
    %c0_13 = arith.constant 0 : index
    %18 = vector.load %arg6[%c0_12, %c0_13] : memref<64x8xbf16, #tpu.memory_space<vmem>>, vector<64x8xbf16>
    %cst_14 = arith.constant dense<0.000000e+00> : vector<8x8xf32>
    %19 = tpu.matmul %17, %18, %cst_14 {dimension_numbers = #tpu.dot_dimension_numbers<[1], [0], [0], [1], [0, 0, 1, 1], [], []>} : vector<8x64xbf16>, vector<64x8xbf16>, vector<8x8xf32> -> vector<8x8xf32>
    %c0_15 = arith.constant 0 : index
    %c0_16 = arith.constant 0 : index
    %20 = vector.load %arg7[%c0_15, %c0_16] : memref<1x8xf32, #tpu.memory_space<vmem>>, vector<1x8xf32>
    %21 = vector.broadcast %20 : vector<1x8xf32> to vector<8x8xf32>
    %22 = arith.addf %19, %21 : vector<8x8xf32>
    %c0_17 = arith.constant 0 : index
    %c0_18 = arith.constant 0 : index
    %23 = vector.load %arg8[%c0_17, %c0_18] : memref<8x8xf32, #tpu.memory_space<vmem>>, vector<8x8xf32>
    tpu.vector_store %arg8[%c0_17, %c0_18], %22 {strides = array<i32>} : memref<8x8xf32, #tpu.memory_space<vmem>>, vector<8x8xf32>,
    return
  }
  func.func @transform_0(%arg0: i32) -> (i32, i32) {
    %c0_i32 = arith.constant 0 : i32
    %c0_i32_0 = arith.constant 0 : i32
    return %arg0, %c0_i32 : i32, i32
  }
  func.func @transform_1(%arg0: i32) -> (i32, i32) {
    %c0_i32 = arith.constant 0 : i32
    %c0_i32_0 = arith.constant 0 : i32
    %c0_i32_1 = arith.constant 0 : i32
    return %c0_i32, %c0_i32_0 : i32, i32
  }
  func.func @transform_2(%arg0: i32) -> (i32, i32) {
    %c0_i32 = arith.constant 0 : i32
    %c0_i32_0 = arith.constant 0 : i32
    %c0_i32_1 = arith.constant 0 : i32
    return %c0_i32, %c0_i32_0 : i32, i32
  }
  func.func @transform_3(%arg0: i32) -> (i32, i32) {
    %c0_i32 = arith.constant 0 : i32
    %c0_i32_0 = arith.constant 0 : i32
    %c0_i32_1 = arith.constant 0 : i32
    return %c0_i32, %c0_i32_0 : i32, i32
  }
  func.func @transform_4(%arg0: i32) -> (i32, i32) {
    %c0_i32 = arith.constant 0 : i32
    %c0_i32_0 = arith.constant 0 : i32
    %c0_i32_1 = arith.constant 0 : i32
    return %c0_i32, %c0_i32_0 : i32, i32
  }
  func.func @transform_5(%arg0: i32) -> (i32, i32) {
    %c0_i32 = arith.constant 0 : i32
    %c0_i32_0 = arith.constant 0 : i32
    %c0_i32_1 = arith.constant 0 : i32
    return %c0_i32, %c0_i32_0 : i32, i32
  }
  func.func @transform_6(%arg0: i32) -> (i32, i32) {
    %c0_i32 = arith.constant 0 : i32
    %c0_i32_0 = arith.constant 0 : i32
    %c0_i32_1 = arith.constant 0 : i32
    return %c0_i32, %c0_i32_0 : i32, i32
  }
  func.func @transform_7(%arg0: i32) -> (i32, i32) {
    %c0_i32 = arith.constant 0 : i32
    %c0_i32_0 = arith.constant 0 : i32
    return %arg0, %c0_i32 : i32, i32
  }
}

</mosaic_0001>

<bundles_post_ra>
// kernel: tpu_custom_call.1
= control target key start
LH: loop header
LB: loop body
LE: loop exit
PB: predicated region body
PF: predicated region fallthrough
CT: control target
= control target key end

     0   :  { %vm69_vm0 = vcmask 1046528   ;;  %vm70_vm1 = vcmask 1047552   ;;  %v358_v1 = vmov 65535   ;;  %s463_s0 = inlined_call_operand.vmem [shape: f32[8,63], index: 0, kind: input, shape index: {}]   ;;  %s464_s1 = inlined_call_operand.vmem [shape: bf16[63,128], index: 1, kind: input, shape index: {}]   ;;  %s465_s2 = inlined_call_operand.vmem [shape: f32[1,128], index: 2, kind: input, shape index: {}]   ;;  %s466_s3 = inlined_call_operand.vmem [shape: bf16[128,64], index: 3, kind: input, shape index: {}]   ;;  %s467_s4 = inlined_call_operand.vmem [shape: f32[1,64], index: 4, kind: input, shape index: {}]   ;;  %s468_s5 = inlined_call_operand.vmem [shape: bf16[64,8], index: 5, kind: input, shape index: {}]   ;;  %s469_s6 = inlined_call_operand.vmem [shape: f32[1,8], index: 6, kind: input, shape index: {}]   ;;  %s470_s7 = inlined_call_operand.hbm [shape: f32[8,8], index: 7, kind: output, shape index: {}]  }
   0x1   :  { %v314_v0 = vld [vmem:[%s464_s1 + $0x18] sm:$0xff]  ;;  %v71_v2 = vsel %vm69_vm0, 4294967295, %v358_v1  ;;  %v321_v6 = vld [vmem:[%s466_s3 + $0x30] sm:$0xff] }
   0x2   :  { %v322_v3 = vld [vmem:[%s466_s3 + $0x38] sm:$0xff]  ;;  %v72_v4 = vsel %vm70_vm1, %v71_v2, 0  ;;  %v313_v7 = vld [vmem:[%s464_s1 + $0x10] sm:$0xff] }
   0x3   :  { %v74_v5 = vand.u32 %v314_v0, %v72_v4  ;;  %159 = vmatpush.bf16.msra.mxu1 %v322_v3 }
   0x5   :  { %80 = vmatpush.bf16.msra.mxu0 %v74_v5 }
   0x6   :  { %12 = vsyncpa [#allocation3], 0  ;;  %v320_v8 = vld [vmem:[%s466_s3 + $0x28] sm:$0xff]  ;;  %v319_v10 = vld [vmem:[%s466_s3 + $0x20] sm:$0xff]  ;;  %vm65_vm2 = vcmask 515072   ;;  %vm210_vm3 = vcmask 523264  }
   0x7   :  { %160 = vmatpush.bf16.msra.mxu1 %v321_v6  ;;  %v312_v9 = vld [vmem:[%s464_s1 + $0x8] sm:$0xff]  ;;  %v311_v11 = vld [vmem:[%s464_s1] sm:$0xff]  ;;  %v318_v13 = vld [vmem:[%s466_s3 + $0x18] sm:$0xff]  ;;  %s359_s14 = smov [#allocation2]   ;;  %s236_s17 = sshll.u32 %s470_s7, 4  ;;  %vm227_vm4 = vcmask 64512   ;;  %s237_s17 = int_to_ptr.hbm [resolvable:$true] %s236_s17 }
   0x8   :  { %v28_v12 = vld [vmem:[%s463_s0] sm:$0xff]  ;;  %v317_v15 = vld [vmem:[%s466_s3 + $0x10] sm:$0xff]  ;;  %v316_v16 = vld [vmem:[%s466_s3 + $0x8] sm:$0xff]  ;;  %s234_s15 = sshll.u32 %s359_s14, 4  ;;  %s235_s15 = int_to_ptr.vmem [resolvable:$true] %s234_s15 }
   0x9   :  { %81 = vmatpush.bf16.msra.mxu0 %v313_v7  ;;  %v29_v14 = vpack.c.bf16 %v28_v12, %v28_v12  ;;  %v315_v17 = vld [vmem:[%s466_s3] sm:$0xff]  ;;  %v326_v18 = vld [vmem:[%s468_s5 + $0x18] sm:$0xff]  ;;  %v325_v19 = vld [vmem:[%s468_s5 + $0x10] sm:$0xff] }
   0xa   :  { %218 = vmatpush.bf16.msra.mxu2 %v326_v18  ;;  %v329_v20 = vld [vmem:[%s465_s2] ss:$0 sm:$0xff]  ;;  %v324_v26 = vld [vmem:[%s468_s5 + $0x8] sm:$0xff] }
   0xb   :  { %161 = vmatpush.bf16.msra.mxu1 %v320_v8  ;;  %v323_v27 = vld [vmem:[%s468_s5] sm:$0xff] }
   0xc   :  { %v330_v28 = vld [vmem:[%s467_s4] ss:$0 sm:$0xff] }
   0xd   :  { %82 = vmatpush.bf16.msra.mxu0 %v312_v9  ;;  %v331_v34 = vld [vmem:[%s469_s6] ss:$0 sm:$0xff] }
   0xe   :  { %219 = vmatpush.bf16.msra.mxu2 %v325_v19 }
   0xf   :  { %162 = vmatpush.bf16.msra.mxu1 %v319_v10 }
  0x11   :  { %83 = vmatpush.bf16.msra.mxu0 %v311_v11 }
  0x12   :  { %220 = vmatpush.bf16.msra.mxu2 %v324_v26 }
  0x13   :  { %163 = vmatpush.bf16.msra.mxu1 %v318_v13 }
  0x14   :  { %261 = vmatmul.msk.bf16.vlgmr.msra.gmra.mxu0 %vm65_vm2, %v29_v14 }
  0x16   :  { %221 = vmatpush.bf16.msra.mxu2 %v323_v27 }
  0x17   :  { %164 = vmatpush.bf16.msra.mxu1 %v317_v15 }
  0x1b   :  { %165 = vmatpush.bf16.msra.mxu1 %v316_v16 }
  0x1f   :  { %166 = vmatpush.bf16.msra.mxu1 %v315_v17 }
  0x91   :  { %v85_v21 = vpop.f32.mrf.mxu0 }
  0x92   :  { %v86_v22 = vadd.f32 %v329_v20, %v85_v21 }
  0x94   :  { %v89_v23 = vmax.f32 %v86_v22, 0.0 }
  0x96   :  { %v90_v24 = vpack.c.bf16 %v89_v23, %v89_v23 }
  0x98   :  { %167 = vmatmul.bf16.vlgmr.msra.gmra.mxu1 %v90_v24 }
  0x99   :  { %v87_v25 = vpop.f32.mrf.mxu0 }
 0x115   :  { %v168_v29 = vpop.f32.mrf.mxu1 }
 0x116   :  { %v169_v30 = vadd.f32 %v330_v28, %v168_v29 }
 0x118   :  { %v172_v31 = vmax.f32 %v169_v30, 0.0 }
 0x11a   :  { %v173_v32 = vpack.c.bf16 %v172_v31, %v172_v31 }
 0x11c   :  { %310 = vmatmul.msk.bf16.vlgmr.msra.gmra.mxu2 %vm210_vm3, %v173_v32 }
 0x11d   :  { %v170_v33 = vpop.f32.mrf.mxu1 }
 0x19f   :  { %v223_v35 = vpop.f32.mrf.mxu2 }
 0x1a0   :  { %v224_v36 = vadd.f32 %v331_v34, %v223_v35 }
 0x1a2   :  { %228 = vst.msk [vmem:[#allocation2] sm:$0xff] %vm227_vm4, %v224_v36 }
 0x1a3   :  { %239 = dma.vmem_to_hbm [thread:$0]  %s235_s15, 128, %s237_s17, [#allocation3]  }
 0x1a7   :  { %v225_v37 = vpop.f32.mrf.mxu2 }
 0x1a8   :  { %356 = dma.done.wait [#allocation3], 128  }
 0x1a9   :  { %357 = vsyncadd [#allocation3], 4294967168 }
 0x1aa   :  { %244 = vsyncpa [#allocation3], 1 }

</bundles_post_ra>
